<compile_context>
chip_gen: v6e
topology: v6e:2x2x1
jax: 0.10.0
libtpu: 0.0.40
codegen_flags: <defaults>
</compile_context>

<pallas_src>
import functools

import jax
import jax.numpy as jnp
from jax.experimental import pallas as pl
from jax.experimental.pallas import tpu as pltpu


# ---------------------------------------------------------------------------
# Shared gate math (f32), MXU matmuls in the weights' dtype with f32 accum.
# ---------------------------------------------------------------------------
def _gru_gate_math(x, h_f32, wxt, wht, b_comb, bh_n, H):
    mm_dtype = wxt.dtype
    # x @ Wx^T + (bx_rz + bh_rz | bx_n)   -- r/z hidden biases pre-folded here.
    gi = jnp.dot(x.astype(mm_dtype), wxt,
                 preferred_element_type=jnp.float32) + b_comb
    # h @ Wh^T (no bias; bh_n added separately since it sits inside r * h_n).
    gh = jnp.dot(h_f32.astype(mm_dtype), wht,
                 preferred_element_type=jnp.float32)

    i_r = gi[:, 0 * H:1 * H]
    i_i = gi[:, 1 * H:2 * H]
    i_n = gi[:, 2 * H:3 * H]
    h_r = gh[:, 0 * H:1 * H]
    h_i = gh[:, 1 * H:2 * H]
    h_n = gh[:, 2 * H:3 * H] + bh_n

    resetgate = jax.nn.sigmoid(i_r + h_r)
    updategate = jax.nn.sigmoid(i_i + h_i)
    # layer1 with numlayer=0 is an empty nn.Sequential -> identity.
    h_n_new = h_n
    newh = jnp.tanh(i_n + resetgate * h_n_new)
    return newh + updategate * (h_f32 - newh)


# ---------------------------------------------------------------------------
# Kernels
# ---------------------------------------------------------------------------
def _gru_cell_kernel(x_ref, h_ref, wxt_ref, wht_ref, bc_ref, bhn_ref, out_ref,
                     *, hidden_size):
    h_f32 = h_ref[...].astype(jnp.float32)
    hy = _gru_gate_math(x_ref[...], h_f32, wxt_ref[...], wht_ref[...],
                        bc_ref[...], bhn_ref[...], hidden_size)
    out_ref[...] = hy.astype(out_ref.dtype)


def _gru_seq_kernel(x_ref, h0_ref, wxt_ref, wht_ref, bc_ref, bhn_ref, out_ref,
                    h_scr, *, hidden_size):
    t = pl.program_id(0)

    @pl.when(t == 0)
    def _():
        h_scr[...] = h0_ref[...].astype(jnp.float32)

    h_f32 = h_scr[...]
    hy = _gru_gate_math(x_ref[0], h_f32, wxt_ref[...], wht_ref[...],
                        bc_ref[...], bhn_ref[...], hidden_size)
    h_scr[...] = hy                       # carry hidden state across timesteps
    out_ref[0] = hy.astype(out_ref.dtype)


# ---------------------------------------------------------------------------
# Parameter prep (done once at model setup, not per call)
# ---------------------------------------------------------------------------
def make_gru_params(wx, bx, wh, bh, dtype=jnp.float32):
    """wx: [3H, I], bx: [3H], wh: [3H, H], bh: [3H] (PyTorch layout)."""
    H = wh.shape[1]
    wx_t = jnp.asarray(wx.T, dtype)                             # [I, 3H]
    wh_t = jnp.asarray(wh.T, dtype)                             # [H, 3H]
    # Fold the r/z parts of bh into bx (they are always summed); keep bh_n
    # separate because it is multiplied by the reset gate.
    b_comb = jnp.concatenate(
        [bx[:2 * H] + bh[:2 * H], bx[2 * H:]]).reshape(1, 3 * H)
    b_comb = b_comb.astype(jnp.float32)
    bh_n = bh[2 * H:].reshape(1, H).astype(jnp.float32)
    return wx_t, wh_t, b_comb, bh_n


# ---------------------------------------------------------------------------
# Wrappers
# ---------------------------------------------------------------------------
@functools.partial(jax.jit, static_argnames=("block_b",))
def gru_mlp_cell_forward(x, h, wx_t, wh_t, b_comb, bh_n, block_b=256):
    """Single GRU-cell step. x: [B, I], h: [B, H]."""
    B, I = x.shape
    H = h.shape[1]
    TB = B if B <= block_b else block_b
    grid = (pl.cdiv(B, TB),)
    kernel = functools.partial(_gru_cell_kernel, hidden_size=H)
    return pl.pallas_call(
        kernel,
        out_shape=jax.ShapeDtypeStruct((B, H), h.dtype),
        grid=grid,
        in_specs=[
            pl.BlockSpec((TB, I), lambda b: (b, 0)),
            pl.BlockSpec((TB, H), lambda b: (b, 0)),
            pl.BlockSpec((I, 3 * H), lambda b: (0, 0)),
            pl.BlockSpec((H, 3 * H), lambda b: (0, 0)),
            pl.BlockSpec((1, 3 * H), lambda b: (0, 0)),
            pl.BlockSpec((1, H), lambda b: (0, 0)),
        ],
        out_specs=pl.BlockSpec((TB, H), lambda b: (b, 0)),
        compiler_params=pltpu.CompilerParams(
            dimension_semantics=("parallel",)),
    )(x, h, wx_t, wh_t, b_comb, bh_n)


@jax.jit
def gru_mlp_cell_scan(x_seq, h0, wx_t, wh_t, b_comb, bh_n):
    """Run the cell over a whole sequence inside one kernel.

    x_seq: [T, B, I], h0: [B, H] -> returns all hidden states [T, B, H].
    Weights stay VMEM-resident across timesteps; h is carried in VMEM scratch.
    """
    T, B, I = x_seq.shape
    H = h0.shape[1]
    kernel = functools.partial(_gru_seq_kernel, hidden_size=H)
    return pl.pallas_call(
        kernel,
        out_shape=jax.ShapeDtypeStruct((T, B, H), h0.dtype),
        grid=(T,),
        in_specs=[
            pl.BlockSpec((1, B, I), lambda t: (t, 0, 0)),
            pl.BlockSpec((B, H), lambda t: (0, 0)),
            pl.BlockSpec((I, 3 * H), lambda t: (0, 0)),   # resident weights
            pl.BlockSpec((H, 3 * H), lambda t: (0, 0)),   # resident weights
            pl.BlockSpec((1, 3 * H), lambda t: (0, 0)),
            pl.BlockSpec((1, H), lambda t: (0, 0)),
        ],
        out_specs=pl.BlockSpec((1, B, H), lambda t: (t, 0, 0)),
        scratch_shapes=[pltpu.VMEM((B, H), jnp.float32)],
        compiler_params=pltpu.CompilerParams(
            dimension_semantics=("arbitrary",)),   # sequential carry over T
    )(x_seq, h0, wx_t, wh_t, b_comb, bh_n)


# ---------------------------------------------------------------------------
# Pure-JAX references
# ---------------------------------------------------------------------------
def _reference_cell(x, h, wx, bx, wh, bh):
    gi = x @ wx.T + bx
    gh = h @ wh.T + bh
    H = h.shape[1]
    i_r, i_i, i_n = gi[:, :H], gi[:, H:2 * H], gi[:, 2 * H:]
    h_r, h_i, h_n = gh[:, :H], gh[:, H:2 * H], gh[:, 2 * H:]
    r = jax.nn.sigmoid(i_r + h_r)
    z = jax.nn.sigmoid(i_i + h_i)
    newh = jnp.tanh(i_n + r * h_n)
    return newh + z * (h - newh)


def _reference_seq(x_seq, h0, wx, bx, wh, bh):
    h = h0
    outs = []
    for t in range(x_seq.shape[0]):
        h = _reference_cell(x_seq[t], h, wx, bx, wh, bh)
        outs.append(h)
    return jnp.stack(outs, axis=0)


if __name__ == "__main__":
    B = 8
    T = 12
    input_size = 16
    hidden_size = 128   # keep H a multiple of 128 so gate slices stay lane-aligned

    key = jax.random.PRNGKey(0)
    k_x, k_xs, k_h, k_wx, k_bx, k_wh, k_bh = jax.random.split(key, 7)

    # Deterministic parameter init, following reset_parameters:
    # uniform(-std, std) with std = 1/sqrt(hidden_size).
    std = 1.0 / (hidden_size ** 0.5)
    wx = jax.random.uniform(k_wx, (3 * hidden_size, input_size),
                            jnp.float32, -std, std)
    bx = jax.random.uniform(k_bx, (3 * hidden_size,), jnp.float32, -std, std)
    wh = jax.random.uniform(k_wh, (3 * hidden_size, hidden_size),
                            jnp.float32, -std, std)
    bh = jax.random.uniform(k_bh, (3 * hidden_size,), jnp.float32, -std, std)

    x = jax.random.normal(k_x, (B, input_size), jnp.float32)
    x_seq = jax.random.normal(k_xs, (T, B, input_size), jnp.float32)
    h = jax.random.normal(k_h, (B, hidden_size), jnp.float32)

    # --- f32 weights: single step ---
    p_f32 = make_gru_params(wx, bx, wh, bh, dtype=jnp.float32)
    out = jax.block_until_ready(gru_mlp_cell_forward(x, h, *p_f32))
    ref = _reference_cell(x, h, wx, bx, wh, bh)
    assert out.shape == (B, hidden_size)
    assert jnp.allclose(out, ref, atol=1e-5, rtol=1e-5), "f32 cell mismatch"

    # --- bf16 weights (f32 accumulation / gate math): single step ---
    p_bf16 = make_gru_params(wx, bx, wh, bh, dtype=jnp.bfloat16)
    out_bf = jax.block_until_ready(gru_mlp_cell_forward(x, h, *p_bf16))
    assert jnp.allclose(out_bf, ref, atol=5e-2, rtol=5e-2), "bf16 cell mismatch"

    # --- f32 weights: whole sequence fused into one kernel ---
    out_seq = jax.block_until_ready(gru_mlp_cell_scan(x_seq, h, *p_f32))
    ref_seq = _reference_seq(x_seq, h, wx, bx, wh, bh)
    assert out_seq.shape == (T, B, hidden_size)
    assert jnp.allclose(out_seq, ref_seq, atol=1e-4, rtol=1e-4), \
        "sequence mismatch"

    print("KERNEL_OK")
</pallas_src>

<mosaic_0001>
module attributes {stable_mosaic.version = 11 : i64} {
  func.func @_gru_cell_kernel(%arg0: i32, %arg1: memref<8x16xf32, #tpu.memory_space<vmem>>, %arg2: memref<8x128xf32, #tpu.memory_space<vmem>>, %arg3: memref<16x384xf32, #tpu.memory_space<vmem>>, %arg4: memref<128x384xf32, #tpu.memory_space<vmem>>, %arg5: memref<1x384xf32, #tpu.memory_space<vmem>>, %arg6: memref<1x128xf32, #tpu.memory_space<vmem>>, %arg7: memref<8x128xf32, #tpu.memory_space<vmem>>) attributes {dimension_semantics = [#tpu.dimension_semantics<parallel>], iteration_bounds = array<i64: 1>, scalar_prefetch = 0 : i64, scratch_operands = 0 : i64, tpu.core_type = #tpu.core_type<tc>, window_params = [{transform_indices = @transform_0, window_bounds = array<i64: 8, 16>}, {transform_indices = @transform_1, window_bounds = array<i64: 8, 128>}, {pipeline_mode = #tpu.pipeline_mode<synchronous>, transform_indices = @transform_2, window_bounds = array<i64: 16, 384>}, {pipeline_mode = #tpu.pipeline_mode<synchronous>, transform_indices = @transform_3, window_bounds = array<i64: 128, 384>}, {pipeline_mode = #tpu.pipeline_mode<synchronous>, transform_indices = @transform_4, window_bounds = array<i64: 1, 384>}, {pipeline_mode = #tpu.pipeline_mode<synchronous>, transform_indices = @transform_5, window_bounds = array<i64: 1, 128>}, {transform_indices = @transform_6, window_bounds = array<i64: 8, 128>}]} {
    %c0 = arith.constant 0 : index
    %c0_0 = arith.constant 0 : index
    %0 = vector.load %arg2[%c0, %c0_0] : memref<8x128xf32, #tpu.memory_space<vmem>>, vector<8x128xf32>
    %c0_1 = arith.constant 0 : index
    %c0_2 = arith.constant 0 : index
    %1 = vector.load %arg1[%c0_1, %c0_2] : memref<8x16xf32, #tpu.memory_space<vmem>>, vector<8x16xf32>
    %c0_3 = arith.constant 0 : index
    %c0_4 = arith.constant 0 : index
    %2 = vector.load %arg3[%c0_3, %c0_4] : memref<16x384xf32, #tpu.memory_space<vmem>>, vector<16x384xf32>
    %c0_5 = arith.constant 0 : index
    %c0_6 = arith.constant 0 : index
    %3 = vector.load %arg4[%c0_5, %c0_6] : memref<128x384xf32, #tpu.memory_space<vmem>>, vector<128x384xf32>
    %c0_7 = arith.constant 0 : index
    %c0_8 = arith.constant 0 : index
    %4 = vector.load %arg5[%c0_7, %c0_8] : memref<1x384xf32, #tpu.memory_space<vmem>>, vector<1x384xf32>
    %c0_9 = arith.constant 0 : index
    %c0_10 = arith.constant 0 : index
    %5 = vector.load %arg6[%c0_9, %c0_10] : memref<1x128xf32, #tpu.memory_space<vmem>>, vector<1x128xf32>
    %cst = arith.constant dense<0.000000e+00> : vector<8x384xf32>
    %6 = tpu.matmul %1, %2, %cst {dimension_numbers = #tpu.dot_dimension_numbers<[1], [0], [0], [1], [0, 0, 1, 1], [], []>} : vector<8x16xf32>, vector<16x384xf32>, vector<8x384xf32> -> vector<8x384xf32>
    %7 = vector.broadcast %4 : vector<1x384xf32> to vector<8x384xf32>
    %8 = arith.addf %6, %7 : vector<8x384xf32>
    %cst_11 = arith.constant dense<0.000000e+00> : vector<8x384xf32>
    %9 = tpu.matmul %0, %3, %cst_11 {dimension_numbers = #tpu.dot_dimension_numbers<[1], [0], [0], [1], [0, 0, 1, 1], [], []>} : vector<8x128xf32>, vector<128x384xf32>, vector<8x384xf32> -> vector<8x384xf32>
    %10 = vector.extract_strided_slice %8 {offsets = [0, 0], sizes = [8, 128], strides = [1, 1]} : vector<8x384xf32> to vector<8x128xf32>
    %11 = vector.extract_strided_slice %8 {offsets = [0, 128], sizes = [8, 128], strides = [1, 1]} : vector<8x384xf32> to vector<8x128xf32>
    %12 = vector.extract_strided_slice %8 {offsets = [0, 256], sizes = [8, 128], strides = [1, 1]} : vector<8x384xf32> to vector<8x128xf32>
    %13 = vector.extract_strided_slice %9 {offsets = [0, 0], sizes = [8, 128], strides = [1, 1]} : vector<8x384xf32> to vector<8x128xf32>
    %14 = vector.extract_strided_slice %9 {offsets = [0, 128], sizes = [8, 128], strides = [1, 1]} : vector<8x384xf32> to vector<8x128xf32>
    %15 = vector.extract_strided_slice %9 {offsets = [0, 256], sizes = [8, 128], strides = [1, 1]} : vector<8x384xf32> to vector<8x128xf32>
    %16 = vector.broadcast %5 : vector<1x128xf32> to vector<8x128xf32>
    %17 = arith.addf %15, %16 : vector<8x128xf32>
    %18 = arith.addf %10, %13 : vector<8x128xf32>
    %19 = arith.negf %18 : vector<8x128xf32>
    %20 = math.exp %19 : vector<8x128xf32>
    %cst_12 = arith.constant 1.000000e+00 : f32
    %21 = vector.broadcast %cst_12 : f32 to vector<8x128xf32>
    %22 = arith.addf %21, %20 : vector<8x128xf32>
    %23 = arith.divf %21, %22 : vector<8x128xf32>
    %24 = arith.addf %11, %14 : vector<8x128xf32>
    %25 = arith.negf %24 : vector<8x128xf32>
    %26 = math.exp %25 : vector<8x128xf32>
    %cst_13 = arith.constant 1.000000e+00 : f32
    %27 = vector.broadcast %cst_13 : f32 to vector<8x128xf32>
    %28 = arith.addf %27, %26 : vector<8x128xf32>
    %29 = arith.divf %27, %28 : vector<8x128xf32>
    %30 = arith.mulf %23, %17 : vector<8x128xf32>
    %31 = arith.addf %12, %30 : vector<8x128xf32>
    %32 = math.tanh %31 : vector<8x128xf32>
    %33 = arith.subf %0, %32 : vector<8x128xf32>
    %34 = arith.mulf %29, %33 : vector<8x128xf32>
    %35 = arith.addf %32, %34 : vector<8x128xf32>
    %c0_14 = arith.constant 0 : index
    %c0_15 = arith.constant 0 : index
    %36 = vector.load %arg7[%c0_14, %c0_15] : memref<8x128xf32, #tpu.memory_space<vmem>>, vector<8x128xf32>
    tpu.vector_store %arg7[%c0_14, %c0_15], %35 {strides = array<i32>} : memref<8x128xf32, #tpu.memory_space<vmem>>, vector<8x128xf32>,
    return
  }
  func.func @transform_0(%arg0: i32) -> (i32, i32) {
    %c0_i32 = arith.constant 0 : i32
    %c0_i32_0 = arith.constant 0 : i32
    return %arg0, %c0_i32 : i32, i32
  }
  func.func @transform_1(%arg0: i32) -> (i32, i32) {
    %c0_i32 = arith.constant 0 : i32
    %c0_i32_0 = arith.constant 0 : i32
    return %arg0, %c0_i32 : i32, i32
  }
  func.func @transform_2(%arg0: i32) -> (i32, i32) {
    %c0_i32 = arith.constant 0 : i32
    %c0_i32_0 = arith.constant 0 : i32
    %c0_i32_1 = arith.constant 0 : i32
    return %c0_i32, %c0_i32_0 : i32, i32
  }
  func.func @transform_3(%arg0: i32) -> (i32, i32) {
    %c0_i32 = arith.constant 0 : i32
    %c0_i32_0 = arith.constant 0 : i32
    %c0_i32_1 = arith.constant 0 : i32
    return %c0_i32, %c0_i32_0 : i32, i32
  }
  func.func @transform_4(%arg0: i32) -> (i32, i32) {
    %c0_i32 = arith.constant 0 : i32
    %c0_i32_0 = arith.constant 0 : i32
    %c0_i32_1 = arith.constant 0 : i32
    return %c0_i32, %c0_i32_0 : i32, i32
  }
  func.func @transform_5(%arg0: i32) -> (i32, i32) {
    %c0_i32 = arith.constant 0 : i32
    %c0_i32_0 = arith.constant 0 : i32
    %c0_i32_1 = arith.constant 0 : i32
    return %c0_i32, %c0_i32_0 : i32, i32
  }
  func.func @transform_6(%arg0: i32) -> (i32, i32) {
    %c0_i32 = arith.constant 0 : i32
    %c0_i32_0 = arith.constant 0 : i32
    return %arg0, %c0_i32 : i32, i32
  }
}

</mosaic_0001>

<bundles_post_ra>
// kernel: gru_mlp_cell_forward.1
= control target key start
LH: loop header
LB: loop body
LE: loop exit
PB: predicated region body
PF: predicated region fallthrough
CT: control target
= control target key end

     0   :  { %11 = vsyncpa [#allocation3], 0  ;;  %s770_s0 = inlined_call_operand.hbm [shape: f32[8,16], index: 0, kind: input, shape index: {}]   ;;  %s771_s1 = inlined_call_operand.hbm [shape: f32[8,128], index: 1, kind: input, shape index: {}]   ;;  %s772_s2 = inlined_call_operand.hbm [shape: f32[16,384], index: 2, kind: input, shape index: {}]   ;;  %s773_s3 = inlined_call_operand.hbm [shape: f32[128,384], index: 3, kind: input, shape index: {}]   ;;  %s774_s4 = inlined_call_operand.vmem [shape: f32[1,384], index: 4, kind: input, shape index: {}]   ;;  %s775_s5 = inlined_call_operand.vmem [shape: f32[1,128], index: 5, kind: input, shape index: {}]   ;;  %s776_s6 = inlined_call_operand.hbm [shape: f32[8,128], index: 6, kind: output, shape index: {}]  }
   0x1   :  { %12 = vsyncpa [#allocation6], 0 }
   0x2   :  { %13 = vsyncpa [#allocation9], 0 }
   0x3   :  { %14 = vsyncpa [#allocation4], 0  ;;  %s674_s21 = smov [#allocation5]   ;;  %s675_s23 = smov [#allocation2]  }
   0x4   :  { %s31_s22 = sshll.u32 %s674_s21, 4  ;;  %s21_s24 = sshll.u32 %s675_s23, 4  ;;  %s32_s22 = int_to_ptr.vmem [resolvable:$true] %s31_s22  ;;  %s22_s24 = int_to_ptr.vmem [resolvable:$true] %s21_s24 }
   0x5   :  { %s574_s25 = scalar_lea.vmem %s32_s22, 128  ;;  %p579_p1 = scmp.lt.s32.totalorder %s32_s22, %s32_s22 }
   0x6   :  { %p575_p0 = scmp.ne.s32.totalorder %s32_s22, %s574_s25  ;;  %p580_p2 = scmp.lt.s32.totalorder %s574_s25, %s574_s25 }
   0x8   :  { %p581_p3 = por %p580_p2, %p579_p1 }
   0xa   :  { %p582_p4 = pnand %p581_p3, %p575_p0 }
   0xc   :  { %585 = shalt.err (!%p582_p4)
}
   0xd   :  { %34 = dma.hbm_to_vmem [thread:$0]  %s771_s1, 128, %s32_s22, [#allocation6]  }
   0xe   :  { %s594_s28 = scalar_lea.vmem %s22_s24, 128  ;;  %p599_p6 = scmp.lt.s32.totalorder %s22_s24, %s22_s24 }
   0xf   :  { %p595_p5 = scmp.ne.s32.totalorder %s22_s24, %s594_s28  ;;  %p600_p7 = scmp.lt.s32.totalorder %s594_s28, %s594_s28 }
  0x11   :  { %p601_p8 = por %p600_p7, %p599_p6 }
  0x13   :  { %p602_p9 = pnand %p601_p8, %p595_p5 }
  0x15   :  { %605 = shalt.err (!%p602_p9)
}
  0x16   :  { %24 = dma.hbm_to_vmem [thread:$0]  %s770_s0, 128, %s22_s24, [#allocation3]  }
  0x17   :  { %s676_s7 = smov [#allocation7]  }
  0x18   :  { %s40_s8 = sshll.u32 %s676_s7, 4  ;;  %s41_s8 = int_to_ptr.vmem [resolvable:$true] %s40_s8 }
  0x19   :  { %s614_s9 = scalar_lea.vmem %s41_s8, 768  ;;  %p619_p11 = scmp.lt.s32.totalorder %s41_s8, %s41_s8 }
  0x1a   :  { %p615_p10 = scmp.ne.s32.totalorder %s41_s8, %s614_s9  ;;  %p620_p12 = scmp.lt.s32.totalorder %s614_s9, %s614_s9 }
  0x1c   :  { %p621_p13 = por %p620_p12, %p619_p11 }
  0x1e   :  { %p622_p0 = pnand %p621_p13, %p615_p10 }
  0x20   :  { %625 = shalt.err (!%p622_p0)
}
  0x21   :  { %s677_s1 = smov 384   ;;  %s678_s10 = smov 24  }
  0x22   :  { %46 = dma.hbm_to_vmem [thread:$0]  %s772_s2, 768, %s41_s8, [#allocation6], %s677_s1, %s677_s1, %s678_s10  }
  0x23   :  { %s679_s13 = smov [#allocation8]  }
  0x24   :  { %s52_s14 = sshll.u32 %s679_s13, 4  ;;  %s53_s14 = int_to_ptr.vmem [resolvable:$true] %s52_s14 }
  0x25   :  { %s634_s0 = scalar_lea.vmem %s53_s14, 6144  ;;  %p639_p2 = scmp.lt.s32.totalorder %s53_s14, %s53_s14 }
  0x26   :  { %p635_p1 = scmp.ne.s32.totalorder %s53_s14, %s634_s0  ;;  %p640_p3 = scmp.lt.s32.totalorder %s634_s0, %s634_s0 }
  0x28   :  { %p641_p4 = por %p640_p3, %p639_p2 }
  0x2a   :  { %p642_p5 = pnand %p641_p4, %p635_p1 }
  0x2c   :  { %645 = shalt.err (!%p642_p5)
}
  0x2d   :  { %58 = dma.hbm_to_vmem [thread:$0]  %s773_s3, 6144, %s53_s14, [#allocation9], %s677_s1, %s677_s1, %s678_s10  }
  0x2e   :  { %666 = dma.done.wait [#allocation3], 128  }
  0x2f   :  { %667 = vsyncadd [#allocation3], 4294967168 }
  0x30   :  { %668 = dma.done.wait [#allocation6], 896  }
  0x31   :  { %669 = vsyncadd [#allocation6], 4294966400 }
  0x32   :  { %670 = dma.done.wait [#allocation9], 6144  }
  0x33   :  { %671 = vsyncadd [#allocation9], 4294961152  ;;  %v680_v0 = vmov 0.0   ;;  %vm681_vm0 = vmmov 0   ;;  %v81_v1 = vld [vmem:[#allocation7 + $0x20] sm:$0xff]  ;;  %v80_v2 = vld [vmem:[#allocation7 + $0x18] sm:$0xff]  ;;  %v134_v59 = vlaneseq }
  0x34   :  { %217 = vmatprep.mubr.f32.mxu0 %v680_v0  ;;  %505 = vmatprep.subr.mxu1 %v680_v0  ;;  %v78_v3 = vld [vmem:[#allocation7 + $0x8] sm:$0xff]  ;;  %v77_v4 = vld [vmem:[#allocation7] sm:$0xff]  ;;  %v76_v5 = vld [vmem:[#allocation2] sm:$0xff]  ;;  %vm149_vm1 = vcmask 130048   ;;  %s682_s18 = smov [#allocation10]  }
  0x35   :  { %509 = vmatprep.mubr.msk.f32.mxu1 %vm681_vm0, %v680_v0  ;;  %181 = vmatprep.subr.mxu0 %v81_v1  ;;  %v129_v6 = vld [vmem:[#allocation8 + $0x170] sm:$0xff]  ;;  %v128_v7 = vld [vmem:[#allocation8 + $0x168] sm:$0xff]  ;;  %v126_v8 = vld [vmem:[#allocation8 + $0x158] sm:$0xff]  ;;  %v135_v60 = vshrl.u32 %v134_v59, 7  ;;  %s469_s19 = sshll.u32 %s682_s18, 4  ;;  %s470_s19 = int_to_ptr.vmem [resolvable:$true] %s469_s19 }
  0x36   :  { %182 = vmatpush1.msra.mxu0 %v80_v2  ;;  %v125_v9 = vld [vmem:[#allocation8 + $0x150] sm:$0xff]  ;;  %v123_v10 = vld [vmem:[#allocation8 + $0x140] sm:$0xff]  ;;  %v122_v11 = vld [vmem:[#allocation8 + $0x138] sm:$0xff]  ;;  %p651_p7 = scmp.lt.s32.totalorder %s470_s19, %s470_s19 }
  0x37   :  { %183 = vmatprep.subr.mxu0 %v78_v3  ;;  %v120_v12 = vld [vmem:[#allocation8 + $0x128] sm:$0xff]  ;;  %v119_v13 = vld [vmem:[#allocation8 + $0x120] sm:$0xff]  ;;  %v117_v14 = vld [vmem:[#allocation8 + $0x110] sm:$0xff]  ;;  %v136_v61 = vsub.s32 0, %v135_v60 }
  0x38   :  { %184 = vmatpush1.msra.mxu0 %v77_v4  ;;  %v82_v15 = vld [vmem:[#allocation7 + $0x28] sm:$0xff]  ;;  %v116_v16 = vld [vmem:[#allocation8 + $0x108] sm:$0xff]  ;;  %v79_v17 = vld [vmem:[#allocation7 + $0x10] sm:$0xff] }
  0x39   :  { %480 = vmatmul.mubr.msk.f32.vlgmr.msra.gmra.mxu0 %vm149_vm1, %v76_v5  ;;  %294 = vmatprep.subr.mxu0 %v129_v6  ;;  %v114_v18 = vld [vmem:[#allocation8 + $0xf8] sm:$0xff]  ;;  %v113_v19 = vld [vmem:[#allocation8 + $0xf0] sm:$0xff]  ;;  %v111_v21 = vld [vmem:[#allocation8 + $0xe0] sm:$0xff]  ;;  %v140_v6 = vsub.s32 1, %v135_v60 }
  0x3a   :  { %295 = vmatpush1.msra.mxu0 %v128_v7  ;;  %358 = vmatprep.mubr.f32.mxu0 %v680_v0  ;;  %v130_v20 = vld [vmem:[#allocation8 + $0x178] sm:$0xff]  ;;  %v127_v23 = vld [vmem:[#allocation8 + $0x160] sm:$0xff]  ;;  %v108_v24 = vld [vmem:[#allocation8 + $0xc8] sm:$0xff] }
  0x3b   :  { %296 = vmatprep.subr.mxu0 %v126_v8  ;;  %506 = vmatpush3.msra.mxu1 %v82_v15  ;;  %v110_v22 = vld [vmem:[#allocation8 + $0xd8] sm:$0xff]  ;;  %v107_v25 = vld [vmem:[#allocation8 + $0xc0] sm:$0xff]  ;;  %v124_v26 = vld [vmem:[#allocation8 + $0x148] sm:$0xff] }
  0x3c   :  { %297 = vmatpush1.msra.mxu0 %v125_v9  ;;  %507 = vmatprep.subr.mxu1 %v680_v0  ;;  %v105_v27 = vld [vmem:[#allocation8 + $0xb0] sm:$0xff]  ;;  %v104_v28 = vld [vmem:[#allocation8 + $0xa8] sm:$0xff]  ;;  %v102_v30 = vld [vmem:[#allocation8 + $0x98] sm:$0xff] }
  0x3d   :  { %298 = vmatprep.subr.mxu0 %v123_v10  ;;  %508 = vmatpush3.msra.mxu1 %v79_v17  ;;  %v121_v29 = vld [vmem:[#allocation8 + $0x130] sm:$0xff]  ;;  %v118_v32 = vld [vmem:[#allocation8 + $0x118] sm:$0xff]  ;;  %v99_v33 = vld [vmem:[#allocation8 + $0x80] sm:$0xff] }
  0x3e   :  { %299 = vmatpush1.msra.mxu0 %v122_v11  ;;  %512 = vmatprep.subr.mxu1 %v680_v0  ;;  %v101_v31 = vld [vmem:[#allocation8 + $0x90] sm:$0xff]  ;;  %v98_v34 = vld [vmem:[#allocation8 + $0x78] sm:$0xff]  ;;  %v115_v35 = vld [vmem:[#allocation8 + $0x100] sm:$0xff] }
  0x3f   :  { %300 = vmatprep.subr.mxu0 %v120_v12  ;;  %510 = vmatmul.mubr.msk.f32.vlgmr.msra.gmra.mxu1 %vm149_vm1, %v76_v5  ;;  %v96_v36 = vld [vmem:[#allocation8 + $0x68] sm:$0xff]  ;;  %v95_v37 = vld [vmem:[#allocation8 + $0x60] sm:$0xff]  ;;  %v93_v39 = vld [vmem:[#allocation8 + $0x50] sm:$0xff] }
  0x40   :  { %301 = vmatpush1.msra.mxu0 %v119_v13  ;;  %513 = vmatpush3.msra.mxu1 %v130_v20  ;;  %v112_v38 = vld [vmem:[#allocation8 + $0xe8] sm:$0xff]  ;;  %v109_v41 = vld [vmem:[#allocation8 + $0xd0] sm:$0xff]  ;;  %v90_v42 = vld [vmem:[#allocation8 + $0x38] sm:$0xff] }
  0x41   :  { %302 = vmatprep.subr.mxu0 %v117_v14  ;;  %514 = vmatprep.subr.mxu1 %v680_v0  ;;  %v92_v40 = vld [vmem:[#allocation8 + $0x48] sm:$0xff]  ;;  %v89_v43 = vld [vmem:[#allocation8 + $0x30] sm:$0xff]  ;;  %v106_v44 = vld [vmem:[#allocation8 + $0xb8] sm:$0xff] }
  0x42   :  { %303 = vmatpush1.msra.mxu0 %v116_v16  ;;  %515 = vmatpush3.msra.mxu1 %v127_v23  ;;  %v87_v45 = vld [vmem:[#allocation8 + $0x20] sm:$0xff]  ;;  %v86_v46 = vld [vmem:[#allocation8 + $0x18] sm:$0xff]  ;;  %v84_v48 = vld [vmem:[#allocation8 + $0x8] sm:$0xff]  ;;  %v144_v16 = vsub.s32 2, %v135_v60 }
  0x43   :  { %304 = vmatprep.subr.mxu0 %v114_v18  ;;  %516 = vmatprep.subr.mxu1 %v680_v0  ;;  %v103_v47 = vld [vmem:[#allocation8 + $0xa0] sm:$0xff]  ;;  %v100_v50 = vld [vmem:[#allocation8 + $0x88] sm:$0xff]  ;;  %v97_v52 = vld [vmem:[#allocation8 + $0x70] sm:$0xff] }
  0x44   :  { %305 = vmatpush1.msra.mxu0 %v113_v19  ;;  %517 = vmatpush3.msra.mxu1 %v124_v26  ;;  %v83_v49 = vld [vmem:[#allocation8] sm:$0xff]  ;;  %v748_v51 = vld [vmem:[#allocation5] sm:$0xff]  ;;  %v94_v53 = vld [vmem:[#allocation8 + $0x58] sm:$0xff] }
  0x45   :  { %306 = vmatprep.subr.mxu0 %v111_v21  ;;  %518 = vmatprep.subr.mxu1 %v680_v0  ;;  %v91_v54 = vld [vmem:[#allocation8 + $0x40] sm:$0xff]  ;;  %v88_v55 = vld [vmem:[#allocation8 + $0x28] sm:$0xff]  ;;  %v85_v56 = vld [vmem:[#allocation8 + $0x10] sm:$0xff] }
  0x46   :  { %307 = vmatpush1.msra.mxu0 %v110_v22  ;;  %519 = vmatpush3.msra.mxu1 %v121_v29  ;;  %v131_v62 = vld [vmem:[%s774_s4] sm:$0x7] }
  0x47   :  { %308 = vmatprep.subr.mxu0 %v108_v24  ;;  %520 = vmatprep.subr.mxu1 %v680_v0  ;;  %v137_v1 = vrot.slane %v131_v62, %v136_v61  ;;  %v141_v7 = vrot.slane %v131_v62, %v140_v6  ;;  %v482_v17 = vld [vmem:[%s775_s5] ss:$0 sm:$0xff]  ;;  %v145_v18 = vrot.slane %v131_v62, %v144_v16  ;;  %s646_s5 = scalar_lea.vmem %s470_s19, 128 }
  0x48   :  { %309 = vmatpush1.msra.mxu0 %v107_v25  ;;  %521 = vmatpush3.msra.mxu1 %v118_v32  ;;  %p647_p6 = scmp.ne.s32.totalorder %s470_s19, %s646_s5  ;;  %p652_p8 = scmp.lt.s32.totalorder %s646_s5, %s646_s5 }
  0x49   :  { %310 = vmatprep.subr.mxu0 %v105_v27  ;;  %522 = vmatprep.subr.mxu1 %v680_v0 }
  0x4a   :  { %311 = vmatpush1.msra.mxu0 %v104_v28  ;;  %523 = vmatpush3.msra.mxu1 %v115_v35  ;;  %p653_p9 = por %p652_p8, %p651_p7 }
  0x4b   :  { %312 = vmatprep.subr.mxu0 %v102_v30  ;;  %524 = vmatprep.subr.mxu1 %v680_v0 }
  0x4c   :  { %313 = vmatpush1.msra.mxu0 %v101_v31  ;;  %525 = vmatpush3.msra.mxu1 %v112_v38  ;;  %p654_p10 = pnand %p653_p9, %p647_p6 }
  0x4d   :  { %314 = vmatprep.subr.mxu0 %v99_v33  ;;  %526 = vmatprep.subr.mxu1 %v680_v0 }
  0x4e   :  { %315 = vmatpush1.msra.mxu0 %v98_v34  ;;  %527 = vmatpush3.msra.mxu1 %v109_v41 }
  0x4f   :  { %316 = vmatprep.subr.mxu0 %v96_v36  ;;  %528 = vmatprep.subr.mxu1 %v680_v0 }
  0x50   :  { %317 = vmatpush1.msra.mxu0 %v95_v37  ;;  %529 = vmatpush3.msra.mxu1 %v106_v44 }
  0x51   :  { %318 = vmatprep.subr.mxu0 %v93_v39  ;;  %530 = vmatprep.subr.mxu1 %v680_v0 }
  0x52   :  { %319 = vmatpush1.msra.mxu0 %v92_v40  ;;  %531 = vmatpush3.msra.mxu1 %v103_v47 }
  0x53   :  { %320 = vmatprep.subr.mxu0 %v90_v42  ;;  %532 = vmatprep.subr.mxu1 %v680_v0 }
  0x54   :  { %321 = vmatpush1.msra.mxu0 %v89_v43  ;;  %533 = vmatpush3.msra.mxu1 %v100_v50 }
  0x55   :  { %322 = vmatprep.subr.mxu0 %v87_v45  ;;  %534 = vmatprep.subr.mxu1 %v680_v0 }
  0x56   :  { %323 = vmatpush1.msra.mxu0 %v86_v46  ;;  %535 = vmatpush3.msra.mxu1 %v97_v52 }
  0x57   :  { %324 = vmatprep.subr.mxu0 %v84_v48  ;;  %544 = vmatprep.mubr.msk.f32.mxu1 %vm681_vm0, %v680_v0 }
  0x58   :  { %325 = vmatpush1.msra.mxu0 %v83_v49  ;;  %536 = vmatprep.subr.mxu1 %v680_v0 }
  0x59   :  { %359 = vmatmul.mubr.f32.vlgmr.msra.gmra.mxu0 %v748_v51  ;;  %537 = vmatpush3.msra.mxu1 %v94_v53 }
  0x5a   :  { %538 = vmatprep.subr.mxu1 %v680_v0 }
  0x5b   :  { %539 = vmatpush3.msra.mxu1 %v91_v54 }
  0x5c   :  { %540 = vmatprep.subr.mxu1 %v680_v0 }
  0x5d   :  { %541 = vmatpush3.msra.mxu1 %v88_v55 }
  0x5e   :  { %542 = vmatprep.subr.mxu1 %v680_v0 }
  0x5f   :  { %543 = vmatpush3.msra.mxu1 %v85_v56 }
  0x60   :  { %545 = vmatmul.mubr.f32.vlgmr.msra.gmra.mxu1 %v748_v51 }
  0xf9   :  { %v219_v63 = vpop.f32.mrf.mxu0 }
  0xfa   :  { %v220_v3 = vadd.f32 %v219_v63, %v137_v1 }
  0xfb   :  { %v221_v2 = vpop.f32.mrf.mxu0 }
  0xfc   :  { %v222_v9 = vadd.f32 %v221_v2, %v141_v7 }
  0xff   :  { %v290_v57 = vpop.f32.mrf.mxu1 }
 0x100   :  { %v291_v22 = vadd.f32 %v290_v57, %v145_v18 }
 0x101   :  { %v511_v58 = vpop.f32.mrf.mxu1 }
 0x119   :  { %v360_v4 = vpop.f32.mrf.mxu0 }
 0x11a   :  { %v442_v5 = vadd.f32 %v360_v4, %v220_v3 }
 0x11b   :  { %v362_v8 = vpop.f32.mrf.mxu0 }
 0x11c   :  { %v483_v0 = vmul.f32 -1.442695, %v442_v5  ;;  %v449_v11 = vadd.f32 %v362_v8, %v222_v9 }
 0x11e   :  { %556 = vpow2.f32 %v483_v0  ;;  %v484_v13 = vmul.f32 -1.442695, %v449_v11 }
 0x120   :  { %v431_v10 = vpop.f32.mrf.mxu1  ;;  %558 = vpow2.f32 %v484_v13 }
 0x121   :  { %v441_v19 = vadd.f32 %v482_v17, %v431_v10 }
 0x122   :  { %v546_v12 = vpop.f32.mrf.mxu1 }
 0x12b   :  { %v557_v14 = vpop.eup %556 }
 0x12c   :  { %v446_v15 = vadd.f32 1.0, %v557_v14 }
 0x12d   :  { %v559_v20 = vpop.eup %558 }
 0x12e   :  { %560 = vrcp.f32 %v446_v15  ;;  %v453_v24 = vadd.f32 1.0, %v559_v20 }
 0x13b   :  { %v561_v21 = vpop.eup %560 }
 0x13c   :  { %v456_v23 = vmul.f32 %v561_v21, %v441_v19 }
 0x13e   :  { %v457_v25 = vadd.f32 %v456_v23, %v291_v22 }
 0x140   :  { %562 = vtanh.f32 %v457_v25 }
 0x141   :  { %564 = vrcp.f32 %v453_v24 }
 0x14d   :  { %v563_v26 = vpop.eup %562 }
 0x14e   :  { %v459_v27 = vsub.f32 %v748_v51, %v563_v26  ;;  %v565_v28 = vpop.eup %564 }
 0x150   :  { %v460_v29 = vmul.f32 %v565_v28, %v459_v27 }
 0x152   :  { %v461_v30 = vadd.f32 %v563_v26, %v460_v29 }
 0x154   :  { %462 = vst [vmem:[#allocation10] sm:$0xff] %v461_v30 }
 0x155   :  { %657 = shalt.err (!%p654_p10)
}
 0x156   :  { %472 = dma.vmem_to_hbm [thread:$0]  %s470_s19, 128, %s776_s6, [#allocation4]  }
 0x157   :  { %672 = dma.done.wait [#allocation4], 128  }
 0x158   :  { %673 = vsyncadd [#allocation4], 4294967168 }
 0x159   :  { %476 = vsyncpa [#allocation3], 1 }
 0x15a   :  { %477 = vsyncpa [#allocation6], 1 }
 0x15b   :  { %478 = vsyncpa [#allocation9], 1 }
 0x15c   :  { %479 = vsyncpa [#allocation4], 1 }

</bundles_post_ra>
